<compile_context>
chip_gen: v6e
topology: v6e:2x2x1
jax: 0.10.0
libtpu: 0.0.40
codegen_flags: <defaults>
</compile_context>

<pallas_src>
import jax
import jax.numpy as jnp
from jax.experimental import pallas as pl
from jax.experimental.pallas import tpu as pltpu

BN_EPS = 1e-5
LANE = 128
BF16_SUBLANE = 16  # bf16 packs 16 rows per vreg sublane group


def _round_up(x, m):
    return (x + m - 1) // m * m


def _pad2d(a, rows, cols):
    r, c = a.shape
    return jnp.pad(a, ((0, rows - r), (0, cols - c)))


def _make_mlp_kernel(n_hidden, has_output):
    """Fused kernel: n_hidden x (Linear + folded-BN + ReLU) (+ optional scalar head)."""

    def kernel(*refs):
        x_ref = refs[0]
        o_ref = refs[-1]
        h = x_ref[...].astype(jnp.float32)      # (TB, D) f32 activations
        idx = 1
        for _ in range(n_hidden):
            w = refs[idx][...]                  # bf16 (in, out_pad)  -- BN scale folded in
            b = refs[idx + 1][...]              # f32  (1, out_pad)   -- bias*scale + shift
            idx += 2
            # bf16 cast feeds the MXU; accumulate + elementwise stay f32.
            h = jnp.dot(h.astype(jnp.bfloat16), w,
                        preferred_element_type=jnp.float32) + b
            h = jnp.maximum(h, 0.0)             # ReLU; Dropout = identity (eval)
        if has_output:
            w = refs[idx][...]                  # f32 (1, last_pad) head weight row
            b = refs[idx + 1][...]              # f32 (1, 1) head bias
            # Scalar head as broadcast-mul + lane reduction (no 99%-zero MXU matmul,
            # no 128-wide padded output).  Result is a true (TB, 1) column.
            s = jnp.sum(h * w, axis=-1, keepdims=True) + b
            o_ref[...] = s.astype(o_ref.dtype)
        else:
            o_ref[...] = h.astype(o_ref.dtype)

    return kernel


def mlp_pallas(x, hidden_params, out_params, *, batch_tile=512):
    """x: (B, D) float32.
    hidden_params: list of (W(in,out), b(1,out), bn_scale(1,out), bn_shift(1,out)).
    out_params: (W(in,1), b(1,1)) or None.
    Returns (B, 1) float32 (or (B, last_hidden) if out_params is None).
    """
    b_sz, in_dim = x.shape
    has_output = out_params is not None
    n_hidden = len(hidden_params)

    # ---- fold BN into the Linear weight/bias; pad only hidden widths to 128 lanes ----------
    kernel_args = []
    cur_dim, cur_pad = in_dim, in_dim           # layer-0 input stays unpadded
    for w, bias, scale, shift in hidden_params:
        out_dim = w.shape[1]
        out_pad = _round_up(out_dim, LANE)
        w_f = w * scale                         # fold BN scale into the weight columns
        b_f = bias * scale + shift              # fold BN shift into the bias
        kernel_args.append(_pad2d(w_f, cur_pad, out_pad).astype(jnp.bfloat16))
        kernel_args.append(_pad2d(b_f, 1, out_pad).astype(jnp.float32))
        cur_dim, cur_pad = out_dim, out_pad
    if has_output:
        w, bias = out_params                    # (cur_dim, 1), (1, 1)
        kernel_args.append(_pad2d(w.T, 1, cur_pad).astype(jnp.float32))   # head row
        kernel_args.append(bias.astype(jnp.float32))                      # (1, 1)
        out_cols_true, out_cols = 1, 1
    else:
        out_cols_true, out_cols = cur_dim, cur_pad

    # ---- batch tiling (multiples of 16 for bf16 sublane packing) ----------------------------
    tb = max(BF16_SUBLANE,
             min(_round_up(batch_tile, BF16_SUBLANE), _round_up(b_sz, BF16_SUBLANE)))
    b_pad = _round_up(b_sz, tb)
    x_in = x if b_pad == b_sz else jnp.pad(x, ((0, b_pad - b_sz), (0, 0)))
    grid = (b_pad // tb,)

    # ---- VMEM budget: 2x (params + activations), capped below v7x's 64 MiB/core ------------
    param_bytes = sum(int(a.size) * a.dtype.itemsize for a in kernel_args)
    widest = max([in_dim, out_cols] + [a.shape[-1] for a in kernel_args])
    act_bytes = 2 * tb * in_dim * 4             # double-buffered f32 input tiles
    act_bytes += 2 * tb * out_cols * 4          # double-buffered output tiles
    act_bytes += 4 * tb * widest * 4            # rough bound on in-kernel intermediates
    vmem_limit = int(min(max(2 * (param_bytes + act_bytes), 16 << 20), 56 << 20))

    kernel = _make_mlp_kernel(n_hidden, has_output)
    out_shape = jax.ShapeDtypeStruct((b_pad, out_cols), jnp.float32)

    in_specs = [pl.BlockSpec((tb, in_dim), lambda i: (i, 0))]
    # Parameter blocks: constant index_map -> fetched once, resident across batch tiles.
    in_specs += [pl.BlockSpec(a.shape, lambda i: (0, 0)) for a in kernel_args]
    out_specs = pl.BlockSpec((tb, out_cols), lambda i: (i, 0))

    y = pl.pallas_call(
        kernel,
        out_shape=out_shape,
        grid=grid,
        in_specs=in_specs,
        out_specs=out_specs,
        compiler_params=pltpu.CompilerParams(
            dimension_semantics=("parallel",),   # independent batch tiles (v7x: 2 TCs)
            vmem_limit_bytes=vmem_limit,
        ),
    )(x_in, *kernel_args)

    return y[:b_sz, :out_cols_true]


def init_params(key, input_dim, layer_dims, output_layer=True):
    """Deterministic, PyTorch-like init. Returns (hidden_params, out_params)."""
    hidden_params = []
    in_dim = input_dim
    for layer_dim in layer_dims:
        key, kw, kb, kg, kbe, km, kv = jax.random.split(key, 7)
        bound = 1.0 / jnp.sqrt(in_dim)
        w = jax.random.uniform(kw, (in_dim, layer_dim), jnp.float32, -bound, bound)
        b = jax.random.uniform(kb, (1, layer_dim), jnp.float32, -bound, bound)
        gamma = jax.random.uniform(kg, (1, layer_dim), jnp.float32, 0.5, 1.5)
        beta = 0.1 * jax.random.normal(kbe, (1, layer_dim), jnp.float32)
        running_mean = 0.1 * jax.random.normal(km, (1, layer_dim), jnp.float32)
        running_var = jax.random.uniform(kv, (1, layer_dim), jnp.float32, 0.5, 1.5)
        # BatchNorm1d (eval) as a per-feature affine; folded into the Linear in mlp_pallas.
        scale = gamma / jnp.sqrt(running_var + BN_EPS)
        shift = beta - running_mean * scale
        hidden_params.append((w, b, scale, shift))
        in_dim = layer_dim

    out_params = None
    if output_layer:
        key, kw, kb = jax.random.split(key, 3)
        bound = 1.0 / jnp.sqrt(in_dim)
        w = jax.random.uniform(kw, (in_dim, 1), jnp.float32, -bound, bound)
        b = jax.random.uniform(kb, (1, 1), jnp.float32, -bound, bound)
        out_params = (w, b)
    return hidden_params, out_params


def mlp_ref(x, hidden_params, out_params):
    """Pure-JAX f32 reference (unfolded Linear -> BN -> ReLU, Dropout identity)."""
    h = x
    for w, b, s, t in hidden_params:
        h = jnp.maximum((h @ w + b) * s + t, 0.0)
    if out_params is not None:
        w, b = out_params
        h = h @ w + b
    return h


if __name__ == "__main__":
    key = jax.random.PRNGKey(0)
    batch, input_dim = 64, 32
    layer_dims = (64, 32)
    dropout = 0.2  # identity at inference

    key, kx, kp = jax.random.split(key, 3)
    x = jax.random.normal(kx, (batch, input_dim), jnp.float32)
    hidden_params, out_params = init_params(kp, input_dim, layer_dims, output_layer=True)

    # Small batch_tile so the run exercises the batch-tiled grid (grid=(4,)).
    y = mlp_pallas(x, hidden_params, out_params, batch_tile=16)
    jax.block_until_ready(y)

    y_ref = mlp_ref(x, hidden_params, out_params)
    assert y.shape == (batch, 1), y.shape
    max_err = float(jnp.max(jnp.abs(y - y_ref)))
    assert jnp.allclose(y, y_ref, atol=5e-2, rtol=5e-2), (max_err, y[:4], y_ref[:4])

    print("KERNEL_OK")
</pallas_src>

<mosaic_0001>
module attributes {stable_mosaic.version = 11 : i64} {
  func.func @kernel(%arg0: i32, %arg1: memref<16x32xf32, #tpu.memory_space<vmem>>, %arg2: memref<32x128xbf16, #tpu.memory_space<vmem>>, %arg3: memref<1x128xf32, #tpu.memory_space<vmem>>, %arg4: memref<128x128xbf16, #tpu.memory_space<vmem>>, %arg5: memref<1x128xf32, #tpu.memory_space<vmem>>, %arg6: memref<1x128xf32, #tpu.memory_space<vmem>>, %arg7: memref<1x1xf32, #tpu.memory_space<vmem>>, %arg8: memref<16x1xf32, #tpu.memory_space<vmem>>) attributes {dimension_semantics = [#tpu.dimension_semantics<parallel>], iteration_bounds = array<i64: 4>, scalar_prefetch = 0 : i64, scratch_operands = 0 : i64, tpu.core_type = #tpu.core_type<tc>, window_params = [{transform_indices = @transform_0, window_bounds = array<i64: 16, 32>}, {pipeline_mode = #tpu.pipeline_mode<synchronous>, transform_indices = @transform_1, window_bounds = array<i64: 32, 128>}, {pipeline_mode = #tpu.pipeline_mode<synchronous>, transform_indices = @transform_2, window_bounds = array<i64: 1, 128>}, {pipeline_mode = #tpu.pipeline_mode<synchronous>, transform_indices = @transform_3, window_bounds = array<i64: 128, 128>}, {pipeline_mode = #tpu.pipeline_mode<synchronous>, transform_indices = @transform_4, window_bounds = array<i64: 1, 128>}, {pipeline_mode = #tpu.pipeline_mode<synchronous>, transform_indices = @transform_5, window_bounds = array<i64: 1, 128>}, {pipeline_mode = #tpu.pipeline_mode<synchronous>, transform_indices = @transform_6, window_bounds = array<i64: 1, 1>}, {transform_indices = @transform_7, window_bounds = array<i64: 16, 1>}]} {
    %c0 = arith.constant 0 : index
    %c0_0 = arith.constant 0 : index
    %0 = vector.load %arg1[%c0, %c0_0] : memref<16x32xf32, #tpu.memory_space<vmem>>, vector<16x32xf32>
    %c0_1 = arith.constant 0 : index
    %c0_2 = arith.constant 0 : index
    %1 = vector.load %arg2[%c0_1, %c0_2] : memref<32x128xbf16, #tpu.memory_space<vmem>>, vector<32x128xbf16>
    %c0_3 = arith.constant 0 : index
    %c0_4 = arith.constant 0 : index
    %2 = vector.load %arg3[%c0_3, %c0_4] : memref<1x128xf32, #tpu.memory_space<vmem>>, vector<1x128xf32>
    %3 = arith.truncf %0 : vector<16x32xf32> to vector<16x32xbf16>
    %cst = arith.constant dense<0.000000e+00> : vector<16x128xf32>
    %4 = tpu.matmul %3, %1, %cst {dimension_numbers = #tpu.dot_dimension_numbers<[1], [0], [0], [1], [0, 0, 1, 1], [], []>} : vector<16x32xbf16>, vector<32x128xbf16>, vector<16x128xf32> -> vector<16x128xf32>
    %5 = vector.broadcast %2 : vector<1x128xf32> to vector<16x128xf32>
    %6 = arith.addf %4, %5 : vector<16x128xf32>
    %cst_5 = arith.constant 0.000000e+00 : f32
    %7 = vector.broadcast %cst_5 : f32 to vector<16x128xf32>
    %8 = arith.maximumf %6, %7 : vector<16x128xf32>
    %c0_6 = arith.constant 0 : index
    %c0_7 = arith.constant 0 : index
    %9 = vector.load %arg4[%c0_6, %c0_7] : memref<128x128xbf16, #tpu.memory_space<vmem>>, vector<128x128xbf16>
    %c0_8 = arith.constant 0 : index
    %c0_9 = arith.constant 0 : index
    %10 = vector.load %arg5[%c0_8, %c0_9] : memref<1x128xf32, #tpu.memory_space<vmem>>, vector<1x128xf32>
    %11 = arith.truncf %8 : vector<16x128xf32> to vector<16x128xbf16>
    %cst_10 = arith.constant dense<0.000000e+00> : vector<16x128xf32>
    %12 = tpu.matmul %11, %9, %cst_10 {dimension_numbers = #tpu.dot_dimension_numbers<[1], [0], [0], [1], [0, 0, 1, 1], [], []>} : vector<16x128xbf16>, vector<128x128xbf16>, vector<16x128xf32> -> vector<16x128xf32>
    %13 = vector.broadcast %10 : vector<1x128xf32> to vector<16x128xf32>
    %14 = arith.addf %12, %13 : vector<16x128xf32>
    %cst_11 = arith.constant 0.000000e+00 : f32
    %15 = vector.broadcast %cst_11 : f32 to vector<16x128xf32>
    %16 = arith.maximumf %14, %15 : vector<16x128xf32>
    %c0_12 = arith.constant 0 : index
    %c0_13 = arith.constant 0 : index
    %17 = vector.load %arg6[%c0_12, %c0_13] : memref<1x128xf32, #tpu.memory_space<vmem>>, vector<1x128xf32>
    %c0_14 = arith.constant 0 : index
    %c0_15 = arith.constant 0 : index
    %18 = vector.load %arg7[%c0_14, %c0_15] : memref<1x1xf32, #tpu.memory_space<vmem>>, vector<1x1xf32>
    %19 = vector.broadcast %17 : vector<1x128xf32> to vector<16x128xf32>
    %20 = arith.mulf %16, %19 : vector<16x128xf32>
    %cst_16 = arith.constant dense<0.000000e+00> : vector<16xf32>
    %21 = vector.multi_reduction <add>, %20, %cst_16 [1] : vector<16x128xf32> to vector<16xf32>
    %22 = vector.shape_cast %21 : vector<16xf32> to vector<16x1xf32>
    %23 = vector.broadcast %18 : vector<1x1xf32> to vector<16x1xf32>
    %24 = arith.addf %22, %23 : vector<16x1xf32>
    %c0_17 = arith.constant 0 : index
    %c0_18 = arith.constant 0 : index
    %25 = vector.load %arg8[%c0_17, %c0_18] : memref<16x1xf32, #tpu.memory_space<vmem>>, vector<16x1xf32>
    tpu.vector_store %arg8[%c0_17, %c0_18], %24 {strides = array<i32>} : memref<16x1xf32, #tpu.memory_space<vmem>>, vector<16x1xf32>,
    return
  }
  func.func @transform_0(%arg0: i32) -> (i32, i32) {
    %c0_i32 = arith.constant 0 : i32
    %c0_i32_0 = arith.constant 0 : i32
    return %arg0, %c0_i32 : i32, i32
  }
  func.func @transform_1(%arg0: i32) -> (i32, i32) {
    %c0_i32 = arith.constant 0 : i32
    %c0_i32_0 = arith.constant 0 : i32
    %c0_i32_1 = arith.constant 0 : i32
    return %c0_i32, %c0_i32_0 : i32, i32
  }
  func.func @transform_2(%arg0: i32) -> (i32, i32) {
    %c0_i32 = arith.constant 0 : i32
    %c0_i32_0 = arith.constant 0 : i32
    %c0_i32_1 = arith.constant 0 : i32
    return %c0_i32, %c0_i32_0 : i32, i32
  }
  func.func @transform_3(%arg0: i32) -> (i32, i32) {
    %c0_i32 = arith.constant 0 : i32
    %c0_i32_0 = arith.constant 0 : i32
    %c0_i32_1 = arith.constant 0 : i32
    return %c0_i32, %c0_i32_0 : i32, i32
  }
  func.func @transform_4(%arg0: i32) -> (i32, i32) {
    %c0_i32 = arith.constant 0 : i32
    %c0_i32_0 = arith.constant 0 : i32
    %c0_i32_1 = arith.constant 0 : i32
    return %c0_i32, %c0_i32_0 : i32, i32
  }
  func.func @transform_5(%arg0: i32) -> (i32, i32) {
    %c0_i32 = arith.constant 0 : i32
    %c0_i32_0 = arith.constant 0 : i32
    %c0_i32_1 = arith.constant 0 : i32
    return %c0_i32, %c0_i32_0 : i32, i32
  }
  func.func @transform_6(%arg0: i32) -> (i32, i32) {
    %c0_i32 = arith.constant 0 : i32
    %c0_i32_0 = arith.constant 0 : i32
    %c0_i32_1 = arith.constant 0 : i32
    return %c0_i32, %c0_i32_0 : i32, i32
  }
  func.func @transform_7(%arg0: i32) -> (i32, i32) {
    %c0_i32 = arith.constant 0 : i32
    %c0_i32_0 = arith.constant 0 : i32
    return %arg0, %c0_i32 : i32, i32
  }
}

</mosaic_0001>

<bundles_post_ra>
// kernel: tpu_custom_call.1
= control target key start
LH: loop header
LB: loop body
LE: loop exit
PB: predicated region body
PF: predicated region fallthrough
CT: control target
= control target key end

     0   :  { %s693_s26 = smov 0   ;;  %s756_s0 = inlined_call_operand.vmem [shape: f32[64,32], index: 0, kind: input, shape index: {}]   ;;  %s757_s1 = inlined_call_operand.vmem [shape: bf16[32,128], index: 1, kind: input, shape index: {}]   ;;  %s758_s2 = inlined_call_operand.vmem [shape: f32[1,128], index: 2, kind: input, shape index: {}]   ;;  %s759_s3 = inlined_call_operand.vmem [shape: bf16[128,128], index: 3, kind: input, shape index: {}]   ;;  %s760_s4 = inlined_call_operand.vmem [shape: f32[1,128], index: 4, kind: input, shape index: {}]   ;;  %s761_s5 = inlined_call_operand.vmem [shape: f32[1,128], index: 5, kind: input, shape index: {}]   ;;  %s762_s6 = inlined_call_operand.<no memory space> [shape: f32[1,1], index: 6, kind: input, shape index: {}]   ;;  %s763_s7 = inlined_call_operand.vmem [shape: f32[64,1], index: 7, kind: output, shape index: {}]  }
   0x1   :  { %v12_v0 = vstv %s762_s6 }
   0x2   :  { %13 = vst [vmem:[#allocation2] sm:$0x1] %v12_v0 }
   0x3 LB: > { %s554_s27 = sadd.s32 4294967295, %s646_s26   ;;  %p558_p0 = scmp.ge.s32.totalorder %s646_s26, 1  ;;  %s646_s26 = sphi %s693_s26, %s19_s26  }
   0x4   : > { %p240_p1 = scmp.lt.s32.totalorder %s646_s26, 5 }
   0x6   : > { %p241_p2 = pnand %p558_p0, %p240_p1 }
   0x7   : > { %s559_s8 = sshll.u32 (!%p241_p2), %s554_s27, 1 }
   0x8   : > { %244 = sbr.rel (%p241_p2) target bundleno = 569 (0x239), region = 48  ;;  %p273_p3 = scmp.lt.s32.totalorder (!%p241_p2), %s559_s8, 7 }
   0xd   : > { %v630_v1 = vld [vmem:[%s757_s1 + $0x8] sm:$0xff]   ;;  %v648_v2 = vmov 0.0   ;;  %v631_v3 = vld [vmem:[%s757_s1] sm:$0xff]   ;;  %vm649_vm0 = vmmov 0   ;;  %v632_v4 = vld [vmem:[%s759_s3 + $0x38] sm:$0xff]   ;;  %s765_s8 = smov (!%p273_p3, %s559_s8), 7 }
   0xe   : > { %592 = vmatprep.subr.bf16.mxu0 %v648_v2  ;;  %600 = vmatprep.subr.bf16.mxu1 %v648_v2  ;;  %v633_v5 = vld [vmem:[%s759_s3 + $0x30] sm:$0xff]   ;;  %s560_s13 = sshll.u32 %s765_s8, 3  ;;  %v634_v6 = vld [vmem:[%s759_s3 + $0x28] sm:$0xff]   ;;  %vm311_vm1 = vcmask 261120   ;;  %v635_v10 = vld [vmem:[%s759_s3 + $0x20] sm:$0xff]   ;;  %vm495_vm2 = vcmask 7168  }
   0xf   : > { %593 = vmatpush3.bf16.msra.mxu0 %v630_v1  ;;  %596 = vmatprep.mubr.msk.bf16.mxu0 %vm649_vm0, %v648_v2  ;;  %s276_s18 = scalar_lea.vmem %s756_s0, %s560_s13  ;;  %v636_v11 = vld [vmem:[%s759_s3 + $0x18] sm:$0xff]   ;;  %v637_v12 = vld [vmem:[%s759_s3 + $0x10] sm:$0xff]   ;;  %v638_v13 = vld [vmem:[%s759_s3 + $0x8] sm:$0xff]   ;;  %s282_s16 = scalar_lea.vmem %s763_s7, %s560_s13 }
  0x10   : > { %594 = vmatprep.subr.bf16.mxu0 %v648_v2  ;;  %616 = vmatprep.mubr.msk.bf16.mxu1 %vm649_vm0, %v648_v2  ;;  %v285_v7 = vld [vmem:[%s276_s18] sm:$0xff]  ;;  %v286_v8 = vld [vmem:[%s276_s18 + $0x8] sm:$0xff] }
  0x11   : > { %601 = vmatpush3.bf16.msra.mxu1 %v632_v4  ;;  %v292_v9 = vpack.c.bf16 %v286_v8, %v285_v7  ;;  %v639_v14 = vld [vmem:[%s759_s3] sm:$0xff]  }
  0x12   : > { %602 = vmatprep.subr.bf16.mxu1 %v648_v2  ;;  %v563_v15 = vld [vmem:[%s758_s2] ss:$0 sm:$0xff] }
  0x13   : > { %595 = vmatpush3.bf16.msra.mxu0 %v631_v3  ;;  %v567_v25 = vld [vmem:[%s760_s4] ss:$0 sm:$0xff] }
  0x14   : > { %v576_v29 = vld [vmem:[%s761_s5] ss:$0 sm:$0xff] }
  0x15   : > { %603 = vmatpush3.bf16.msra.mxu1 %v633_v5  ;;  %v577_v37 = vld [vmem:[#allocation2] ss:$0 sm:$0xff] }
  0x16   : > { %604 = vmatprep.subr.bf16.mxu1 %v648_v2  ;;  %597 = vmatmul.mubr.msk.bf16.vlgmr.msra.gmra.mxu0 %vm311_vm1, %v292_v9 }
  0x19   : > { %605 = vmatpush3.bf16.msra.mxu1 %v634_v6 }
  0x1a   : > { %606 = vmatprep.subr.bf16.mxu1 %v648_v2 }
  0x1d   : > { %607 = vmatpush3.bf16.msra.mxu1 %v635_v10 }
  0x1e   : > { %608 = vmatprep.subr.bf16.mxu1 %v648_v2 }
  0x21   : > { %609 = vmatpush3.bf16.msra.mxu1 %v636_v11 }
  0x22   : > { %610 = vmatprep.subr.bf16.mxu1 %v648_v2 }
  0x25   : > { %611 = vmatpush3.bf16.msra.mxu1 %v637_v12 }
  0x26   : > { %612 = vmatprep.subr.bf16.mxu1 %v648_v2 }
  0x29   : > { %613 = vmatpush3.bf16.msra.mxu1 %v638_v13 }
  0x2a   : > { %614 = vmatprep.subr.bf16.mxu1 %v648_v2 }
  0x2d   : > { %615 = vmatpush3.bf16.msra.mxu1 %v639_v14 }
  0xd6   : > { %v349_v16 = vpop.f32.mrf.mxu0 }
  0xd7   : > { %v350_v18 = vadd.f32 %v563_v15, %v349_v16 }
  0xd8   : > { %v598_v17 = vpop.f32.mrf.mxu0 }
  0xd9   : > { %v356_v22 = vmax.f32 %v350_v18, 0.0 }
  0xda   : > { %v352_v19 = vpop.f32.mrf.mxu0 }
  0xdb   : > { %v353_v20 = vadd.f32 %v563_v15, %v352_v19 }
  0xdc   : > { %v599_v21 = vpop.f32.mrf.mxu0 }
  0xdd   : > { %v357_v23 = vmax.f32 %v353_v20, 0.0 }
  0xdf   : > { %v375_v24 = vpack.c.bf16 %v357_v23, %v356_v22 }
  0xe1   : > { %617 = vmatmul.mubr.bf16.vlgmr.msra.gmra.mxu1 %v375_v24 }
 0x1a1   : > { %v464_v26 = vpop.f32.mrf.mxu1 }
 0x1a2   : > { %v465_v27 = vadd.f32 %v567_v25, %v464_v26 }
 0x1a3   : > { %v618_v28 = vpop.f32.mrf.mxu1 }
 0x1a4   : > { %v471_v30 = vmax.f32 %v465_v27, 0.0 }
 0x1a5   : > { %v467_v31 = vpop.f32.mrf.mxu1 }
 0x1a6   : > { %v468_v32 = vadd.f32 %v567_v25, %v467_v31  ;;  %v481_v33 = vmul.f32 %v576_v29, %v471_v30 }
 0x1a7   : > { %v619_v34 = vpop.f32.mrf.mxu1 }
 0x1a8   : > { %v472_v35 = vmax.f32 %v468_v32, 0.0  ;;  %483 = vadd.xlane.f32.xlu0 %v481_v33 }
 0x1aa   : > { %v482_v36 = vmul.f32 %v576_v29, %v472_v35 }
 0x1ac   : > { %485 = vadd.xlane.f32.xlu0 %v482_v36 }
 0x231   : > { %v484_v38 = vpop.xlane.xlu0 %483 }
 0x232   : > { %v493_v39 = vadd.f32 %v577_v37, %v484_v38 }
 0x234   : > { %496 = vst.msk [vmem:[%s282_s16] sm:$0xff] %vm495_vm2, %v493_v39 }
 0x235   : > { %v486_v40 = vpop.xlane.xlu0 %485 }
 0x236   : > { %v494_v41 = vadd.f32 %v577_v37, %v486_v40 }
 0x238   : > { %497 = vst.msk [vmem:[%s282_s16 + $0x8] sm:$0xff] %vm495_vm2, %v494_v41 }
 0x239 PF: > { %s19_s26 = sadd.s32 1, %s646_s26  }
 0x23a   : > { %p16_p4 = scmp.ge.s32.totalorder %s19_s26, 6  }
 0x23c   :  { %18 = sbr.rel (!%p16_p4) target bundleno = 3 (0x3), region = 78 }

</bundles_post_ra>
